<compile_context>
chip_gen: v6e
topology: v6e:2x2x1
jax: 0.10.0
libtpu: 0.0.40
codegen_flags: <defaults>
</compile_context>

<pallas_src>
import functools

import jax
import jax.numpy as jnp
from jax import lax
from jax.experimental import pallas as pl
from jax.experimental.pallas import tpu as pltpu


_CHUNK = 512  # batch columns processed per inner iteration (keeps temporaries tiny)


def _mlp_kernel(x_ref, w1_ref, b1_ref, w2_ref, b2_ref, w3_ref, b3_ref, o_ref,
                *, n_chunks, chunk, matmul_dtype):
    # x_ref: [TB, F] (native layout), o_ref: [1, TB] (lane-dense)
    cast = (lambda a: a.astype(matmul_dtype)) if matmul_dtype is not None else (lambda a: a)

    # Weights/biases are tiny and VMEM-resident across grid steps; hoist the loads.
    w1 = cast(w1_ref[...])           # [64, F]
    w2 = cast(w2_ref[...])           # [32, 64]
    w3 = cast(w3_ref[...])           # [1, 32]
    b1 = b1_ref[...]                 # [64, 1]
    b2 = b2_ref[...]                 # [32, 1]
    b3 = b3_ref[0]                   # scalar bias (SMEM)

    def compute_chunk(start):
        # x sub-chunk in native [chunk, F] layout; contract the feature dims so the
        # result is [64, chunk] with the batch on the lane axis (no host transpose).
        xc = cast(x_ref[pl.ds(start, chunk), :])

        # fc1 + ReLU : w1 [64,F] x xc [chunk,F]^T -> [64, chunk]
        h1 = lax.dot_general(w1, xc, (((1,), (1,)), ((), ())),
                             preferred_element_type=jnp.float32)
        h1 = jnp.maximum(h1 + b1, 0.0)
        # (dropout1: identity at inference)

        # fc2 + ReLU : [32, 64] @ [64, chunk] -> [32, chunk]
        h2 = jnp.dot(w2, cast(h1), preferred_element_type=jnp.float32)
        h2 = jnp.maximum(h2 + b2, 0.0)
        # (dropout2: identity at inference)

        # output : [1, 32] @ [32, chunk] -> [1, chunk]   (lane-dense)
        logit = jnp.dot(w3, cast(h2), preferred_element_type=jnp.float32) + b3

        # sigmoid via single EUP tanh op (exact: sigmoid(x) = 0.5*tanh(0.5x) + 0.5)
        o_ref[:, pl.ds(start, chunk)] = (
            0.5 * jnp.tanh(0.5 * logit) + 0.5).astype(o_ref.dtype)

    if n_chunks == 1:
        compute_chunk(0)
    else:
        def body(c, carry):
            compute_chunk(pl.multiple_of(c * chunk, chunk))
            return carry
        lax.fori_loop(0, n_chunks, body, 0)


def _round_up(a, m):
    return ((a + m - 1) // m) * m


def predictor_dnn(x, params, *, block_batch=32768, matmul_dtype=None):
    """x: [B, input_size] float32 (PyTorch layout). Returns [B, 1] float32."""
    w1, b1 = params["w1"], params["b1"]   # [64, F], [64, 1]
    w2, b2 = params["w2"], params["b2"]   # [32, 64], [32, 1]
    w3, b3 = params["w3"], params["b3"]   # [1, 32],  [1]
    B, F = x.shape

    # Batch tile selection:
    #  * large B  : big lane-aligned tiles (multiple of _CHUNK) to amortize the
    #               ~0.35 us per-grid-step overhead;
    #  * medium B : split into >=2 grid steps so both v7x TensorCores get work;
    #  * tiny B   : a single full-batch tile.
    if B > block_batch:
        TB = max(_CHUNK, _round_up(block_batch, _CHUNK))
    elif B >= 256:
        TB = _round_up(-(-B // 2), 128)
        if TB > _CHUNK:
            TB = _round_up(TB, _CHUNK)
    else:
        TB = B
    chunk = min(_CHUNK, TB)
    n_chunks = TB // chunk                       # exact by construction
    grid = (pl.cdiv(B, TB),)

    const2d = lambda a: pl.BlockSpec(a.shape, lambda i: (0, 0))  # VMEM-resident params
    param_bytes = sum(int(a.size) * 4 for a in (w1, b1, w2, b2, w3, b3))

    kernel = functools.partial(_mlp_kernel, n_chunks=n_chunks, chunk=chunk,
                               matmul_dtype=matmul_dtype)

    out = pl.pallas_call(
        kernel,
        out_shape=jax.ShapeDtypeStruct((1, B), jnp.float32),
        grid=grid,
        in_specs=[
            pl.BlockSpec((TB, F), lambda i: (i, 0)),  # x tile, native layout, pipelined
            const2d(w1), const2d(b1),
            const2d(w2), const2d(b2),
            const2d(w3),
            pl.BlockSpec(memory_space=pltpu.MemorySpace.SMEM),  # b3 scalar
        ],
        out_specs=pl.BlockSpec((1, TB), lambda i: (0, i)),       # lane-dense output
        compiler_params=pltpu.CompilerParams(
            dimension_semantics=("parallel",),        # shard batch across v7x TCs
            vmem_limit_bytes=32 * 1024 * 1024,        # explicit: v5e scoped default is 16 MiB
        ),
        cost_estimate=pl.CostEstimate(
            flops=2 * (F * 64 + 64 * 32 + 32) * B,
            transcendentals=B,
            bytes_accessed=B * (F + 1) * 4 + param_bytes,
        ),
    )(x, w1, b1, w2, b2, w3, b3)

    # (1, B) row-major is the same linear data as (B, 1): free reshape.
    return out.reshape(B, 1)


def init_params(key, input_size=30):
    """PyTorch nn.Linear-style init (uniform +/- 1/sqrt(fan_in)).
    Weights stored as [out_features, in_features] (PyTorch layout);
    b1/b2 as [out_features, 1]; b3 as a length-1 vector."""
    ks = jax.random.split(key, 6)

    def linear(kw, kb, fan_in, fan_out):
        bound = 1.0 / jnp.sqrt(fan_in)
        w = jax.random.uniform(kw, (fan_out, fan_in), jnp.float32, -bound, bound)
        b = jax.random.uniform(kb, (fan_out, 1), jnp.float32, -bound, bound)
        return w, b

    w1, b1 = linear(ks[0], ks[1], input_size, 64)
    w2, b2 = linear(ks[2], ks[3], 64, 32)
    w3, b3 = linear(ks[4], ks[5], 32, 1)
    return {"w1": w1, "b1": b1, "w2": w2, "b2": b2, "w3": w3, "b3": b3.reshape(1)}


def reference(x, p):
    h1 = jnp.maximum(x @ p["w1"].T + p["b1"].T, 0.0)
    h2 = jnp.maximum(h1 @ p["w2"].T + p["b2"].T, 0.0)
    return jax.nn.sigmoid(h2 @ p["w3"].T + p["b3"])


if __name__ == "__main__":
    key = jax.random.PRNGKey(0)
    k_x, k_p = jax.random.split(key)

    input_size = 30
    params = init_params(k_p, input_size=input_size)

    # Primary small-shape check (single tile, single chunk).
    batch = 8
    x = jax.random.normal(k_x, (batch, input_size), dtype=jnp.float32)
    out = jax.block_until_ready(predictor_dnn(x, params))
    ref = reference(x, params)
    assert out.shape == (batch, 1), out.shape
    assert jnp.allclose(out, ref, atol=1e-5, rtol=1e-5), "mismatch vs reference (B=8)"

    # Also exercise the multi-step grid / partial last tile / multi-chunk paths.
    for b in (1000, 2600):
        xb = jax.random.normal(jax.random.PRNGKey(b), (b, input_size), dtype=jnp.float32)
        ob = jax.block_until_ready(predictor_dnn(xb, params, block_batch=2048))
        rb = reference(xb, params)
        assert ob.shape == (b, 1), ob.shape
        assert jnp.allclose(ob, rb, atol=1e-5, rtol=1e-5), f"mismatch vs reference (B={b})"

    print("KERNEL_OK")
</pallas_src>

<mosaic_0001>
module attributes {stable_mosaic.version = 11 : i64} {
  func.func @_mlp_kernel(%arg0: i32, %arg1: memref<8x30xf32, #tpu.memory_space<vmem>>, %arg2: memref<64x30xf32, #tpu.memory_space<vmem>>, %arg3: memref<64x1xf32, #tpu.memory_space<vmem>>, %arg4: memref<32x64xf32, #tpu.memory_space<vmem>>, %arg5: memref<32x1xf32, #tpu.memory_space<vmem>>, %arg6: memref<1x32xf32, #tpu.memory_space<vmem>>, %arg7: memref<1xf32, #tpu.memory_space<smem>>, %arg8: memref<1x8xf32, #tpu.memory_space<vmem>>) attributes {dimension_semantics = [#tpu.dimension_semantics<parallel>], iteration_bounds = array<i64: 1>, scalar_prefetch = 0 : i64, scratch_operands = 0 : i64, tpu.core_type = #tpu.core_type<tc>, window_params = [{transform_indices = @transform_0, window_bounds = array<i64: 8, 30>}, {pipeline_mode = #tpu.pipeline_mode<synchronous>, transform_indices = @transform_1, window_bounds = array<i64: 64, 30>}, {pipeline_mode = #tpu.pipeline_mode<synchronous>, transform_indices = @transform_2, window_bounds = array<i64: 64, 1>}, {pipeline_mode = #tpu.pipeline_mode<synchronous>, transform_indices = @transform_3, window_bounds = array<i64: 32, 64>}, {pipeline_mode = #tpu.pipeline_mode<synchronous>, transform_indices = @transform_4, window_bounds = array<i64: 32, 1>}, {pipeline_mode = #tpu.pipeline_mode<synchronous>, transform_indices = @transform_5, window_bounds = array<i64: 1, 32>}, {transform_indices = @transform_6, window_bounds = array<i64: 1>}, {transform_indices = @transform_7, window_bounds = array<i64: 1, 8>}]} {
    %c0 = arith.constant 0 : index
    %c0_0 = arith.constant 0 : index
    %0 = vector.load %arg2[%c0, %c0_0] : memref<64x30xf32, #tpu.memory_space<vmem>>, vector<64x30xf32>
    %c0_1 = arith.constant 0 : index
    %c0_2 = arith.constant 0 : index
    %1 = vector.load %arg4[%c0_1, %c0_2] : memref<32x64xf32, #tpu.memory_space<vmem>>, vector<32x64xf32>
    %c0_3 = arith.constant 0 : index
    %c0_4 = arith.constant 0 : index
    %2 = vector.load %arg6[%c0_3, %c0_4] : memref<1x32xf32, #tpu.memory_space<vmem>>, vector<1x32xf32>
    %c0_5 = arith.constant 0 : index
    %c0_6 = arith.constant 0 : index
    %3 = vector.load %arg3[%c0_5, %c0_6] : memref<64x1xf32, #tpu.memory_space<vmem>>, vector<64x1xf32>
    %c0_7 = arith.constant 0 : index
    %c0_8 = arith.constant 0 : index
    %4 = vector.load %arg5[%c0_7, %c0_8] : memref<32x1xf32, #tpu.memory_space<vmem>>, vector<32x1xf32>
    %c0_9 = arith.constant 0 : index
    %5 = memref.load %arg7[%c0_9] : memref<1xf32, #tpu.memory_space<smem>>
    %c0_10 = arith.constant 0 : index
    %c0_11 = arith.constant 0 : index
    %6 = vector.load %arg1[%c0_10, %c0_11] : memref<8x30xf32, #tpu.memory_space<vmem>>, vector<8x30xf32>
    %cst = arith.constant dense<0.000000e+00> : vector<64x8xf32>
    %7 = tpu.matmul %0, %6, %cst {dimension_numbers = #tpu.dot_dimension_numbers<[1], [1], [0], [0], [0, 0, 1, 0], [], []>} : vector<64x30xf32>, vector<8x30xf32>, vector<64x8xf32> -> vector<64x8xf32>
    %8 = vector.broadcast %3 : vector<64x1xf32> to vector<64x8xf32>
    %9 = arith.addf %7, %8 : vector<64x8xf32>
    %cst_12 = arith.constant 0.000000e+00 : f32
    %10 = vector.broadcast %cst_12 : f32 to vector<64x8xf32>
    %11 = arith.maximumf %9, %10 : vector<64x8xf32>
    %cst_13 = arith.constant dense<0.000000e+00> : vector<32x8xf32>
    %12 = tpu.matmul %1, %11, %cst_13 {dimension_numbers = #tpu.dot_dimension_numbers<[1], [0], [0], [1], [0, 0, 1, 1], [], []>} : vector<32x64xf32>, vector<64x8xf32>, vector<32x8xf32> -> vector<32x8xf32>
    %13 = vector.broadcast %4 : vector<32x1xf32> to vector<32x8xf32>
    %14 = arith.addf %12, %13 : vector<32x8xf32>
    %cst_14 = arith.constant 0.000000e+00 : f32
    %15 = vector.broadcast %cst_14 : f32 to vector<32x8xf32>
    %16 = arith.maximumf %14, %15 : vector<32x8xf32>
    %cst_15 = arith.constant dense<0.000000e+00> : vector<1x8xf32>
    %17 = tpu.matmul %2, %16, %cst_15 {dimension_numbers = #tpu.dot_dimension_numbers<[1], [0], [0], [1], [0, 0, 1, 1], [], []>} : vector<1x32xf32>, vector<32x8xf32>, vector<1x8xf32> -> vector<1x8xf32>
    %18 = vector.broadcast %5 : f32 to vector<1x8xf32>
    %19 = arith.addf %17, %18 : vector<1x8xf32>
    %cst_16 = arith.constant 5.000000e-01 : f32
    %20 = vector.broadcast %cst_16 : f32 to vector<1x8xf32>
    %21 = arith.mulf %20, %19 : vector<1x8xf32>
    %22 = math.tanh %21 : vector<1x8xf32>
    %cst_17 = arith.constant 5.000000e-01 : f32
    %23 = vector.broadcast %cst_17 : f32 to vector<1x8xf32>
    %24 = arith.mulf %23, %22 : vector<1x8xf32>
    %cst_18 = arith.constant 5.000000e-01 : f32
    %25 = vector.broadcast %cst_18 : f32 to vector<1x8xf32>
    %26 = arith.addf %24, %25 : vector<1x8xf32>
    %c0_19 = arith.constant 0 : index
    %c0_20 = arith.constant 0 : index
    %27 = vector.load %arg8[%c0_19, %c0_20] : memref<1x8xf32, #tpu.memory_space<vmem>>, vector<1x8xf32>
    tpu.vector_store %arg8[%c0_19, %c0_20], %26 {strides = array<i32>} : memref<1x8xf32, #tpu.memory_space<vmem>>, vector<1x8xf32>,
    return
  }
  func.func @transform_0(%arg0: i32) -> (i32, i32) {
    %c0_i32 = arith.constant 0 : i32
    %c0_i32_0 = arith.constant 0 : i32
    return %arg0, %c0_i32 : i32, i32
  }
  func.func @transform_1(%arg0: i32) -> (i32, i32) {
    %c0_i32 = arith.constant 0 : i32
    %c0_i32_0 = arith.constant 0 : i32
    %c0_i32_1 = arith.constant 0 : i32
    return %c0_i32, %c0_i32_0 : i32, i32
  }
  func.func @transform_2(%arg0: i32) -> (i32, i32) {
    %c0_i32 = arith.constant 0 : i32
    %c0_i32_0 = arith.constant 0 : i32
    %c0_i32_1 = arith.constant 0 : i32
    return %c0_i32, %c0_i32_0 : i32, i32
  }
  func.func @transform_3(%arg0: i32) -> (i32, i32) {
    %c0_i32 = arith.constant 0 : i32
    %c0_i32_0 = arith.constant 0 : i32
    %c0_i32_1 = arith.constant 0 : i32
    return %c0_i32, %c0_i32_0 : i32, i32
  }
  func.func @transform_4(%arg0: i32) -> (i32, i32) {
    %c0_i32 = arith.constant 0 : i32
    %c0_i32_0 = arith.constant 0 : i32
    %c0_i32_1 = arith.constant 0 : i32
    return %c0_i32, %c0_i32_0 : i32, i32
  }
  func.func @transform_5(%arg0: i32) -> (i32, i32) {
    %c0_i32 = arith.constant 0 : i32
    %c0_i32_0 = arith.constant 0 : i32
    %c0_i32_1 = arith.constant 0 : i32
    return %c0_i32, %c0_i32_0 : i32, i32
  }
  func.func @transform_6(%arg0: i32) -> i32 {
    %c0_i32 = arith.constant 0 : i32
    %c0_i32_0 = arith.constant 0 : i32
    return %c0_i32 : i32
  }
  func.func @transform_7(%arg0: i32) -> (i32, i32) {
    %c0_i32 = arith.constant 0 : i32
    %c0_i32_0 = arith.constant 0 : i32
    return %c0_i32, %arg0 : i32, i32
  }
}

</mosaic_0001>

<bundles_post_ra>
// kernel: tpu_custom_call.1
= control target key start
LH: loop header
LB: loop body
LE: loop exit
PB: predicated region body
PF: predicated region fallthrough
CT: control target
= control target key end

     0   :  { %vm95_vm0 = vcmask 244736   ;;  %v570_v3 = vmov 0   ;;  %s712_s0 = inlined_call_operand.vmem [shape: f32[8,30], index: 0, kind: input, shape index: {}]   ;;  %s713_s1 = inlined_call_operand.vmem [shape: f32[64,30], index: 1, kind: input, shape index: {}]   ;;  %s714_s2 = inlined_call_operand.vmem [shape: f32[64,1], index: 2, kind: input, shape index: {}]   ;;  %s715_s3 = inlined_call_operand.vmem [shape: f32[32,64], index: 3, kind: input, shape index: {}]   ;;  %s716_s4 = inlined_call_operand.vmem [shape: f32[32,1], index: 4, kind: input, shape index: {}]   ;;  %s717_s5 = inlined_call_operand.vmem [shape: f32[1,32], index: 5, kind: input, shape index: {}]   ;;  %s718_s6 = inlined_call_operand.<no memory space> [shape: f32[1], index: 6, kind: input, shape index: {}]   ;;  %s719_s7 = inlined_call_operand.hbm [shape: f32[1,8], index: 7, kind: output, shape index: {}]  }
   0x1   :  { %v54_v0 = vld [vmem:[%s712_s0] sm:$0xff]  ;;  %v29_v2 = vld [vmem:[%s713_s1 + $0x8] sm:$0xff]  ;;  %544 = vset.pattern.permute.xlu0 %v570_v3  ;;  %v30_v4 = vld [vmem:[%s713_s1 + $0x10] sm:$0xff]  ;;  %545 = vset.pattern.permute.xlu1 %v570_v3 }
   0x2   :  { %v28_v1 = vld [vmem:[%s713_s1] sm:$0xff]  ;;  %493 = vmatprep.subr.msk.mxu0 %vm95_vm0, %v54_v0  ;;  %v48_v5 = vld [vmem:[%s714_s2 + $0x38] sm:$0xff]  ;;  %v46_v6 = vld [vmem:[%s714_s2 + $0x28] sm:$0xff] }
   0x3   :  { %495 = vmatprep.mubr.msk.f32.mxu0 %vm95_vm0, %v28_v1  ;;  %494 = vmatpush3.xpose.msk.msra.mxu0 %vm95_vm0, %v54_v0  ;;  %v47_v7 = vld [vmem:[%s714_s2 + $0x30] sm:$0xff]  ;;  %v45_v8 = vld [vmem:[%s714_s2 + $0x20] sm:$0xff]  ;;  %v31_v9 = vld [vmem:[%s713_s1 + $0x18] sm:$0xff] }
   0x4   :  { %92 = vperm.xlu0 %544, %v48_v5   ;;  %82 = vperm.xlu1 %545, %v46_v6   ;;  %v32_v10 = vld [vmem:[%s713_s1 + $0x20] sm:$0xff] }
   0x6   :  { %496 = vmatmul.mubr.msk.f32.vlgmr.msra.gmra.mxu0 %vm95_vm0, %v29_v2 }
   0x7   :  { %498 = vmatprep.mubr.msk.f32.mxu0 %vm95_vm0, %v30_v4 }
   0x8   :  { %13 = vsyncpa [#allocation4], 0  ;;  %87 = vperm.xlu0 %544, %v47_v7   ;;  %77 = vperm.xlu1 %545, %v45_v8   ;;  %v44_v11 = vld [vmem:[%s714_s2 + $0x18] sm:$0xff]  ;;  %v43_v12 = vld [vmem:[%s714_s2 + $0x10] sm:$0xff]  ;;  %vm256_vm1 = vcmask 523264   ;;  %v571_v58 = vmov 0.0  }
   0x9   :  { %v33_v13 = vld [vmem:[%s713_s1 + $0x28] sm:$0xff]  ;;  %v34_v14 = vld [vmem:[%s713_s1 + $0x30] sm:$0xff]  ;;  %v41_v16 = vld [vmem:[%s714_s2] sm:$0xff]  ;;  %529 = vmatprep.subr.mxu0 %v571_v58  ;;  %vm572_vm2 = vmmov 0   ;;  %vm359_vm3 = vcmask 261120   ;;  %s573_s26 = smov [#allocation3]  }
   0xa   :  { %499 = vmatmul.mubr.msk.f32.gmra.mxu0 %vm95_vm0, %v31_v9  ;;  %v42_v15 = vld [vmem:[%s714_s2 + $0x8] sm:$0xff]  ;;  %v35_v17 = vld [vmem:[%s713_s1 + $0x38] sm:$0xff]  ;;  %v51_v19 = vld [vmem:[%s716_s4 + $0x10] sm:$0xff]  ;;  %s445_s27 = sshll.u32 %s573_s26, 4  ;;  %vm437_vm4 = vcmask 57344   ;;  %s446_s27 = int_to_ptr.vmem [resolvable:$true] %s445_s27 }
   0xb   :  { %501 = vmatprep.mubr.msk.f32.mxu0 %vm95_vm0, %v32_v10  ;;  %v52_v18 = vld [vmem:[%s716_s4 + $0x18] sm:$0xff]  ;;  %v50_v20 = vld [vmem:[%s716_s4 + $0x8] sm:$0xff]  ;;  %v49_v21 = vld [vmem:[%s716_s4] sm:$0xff]  ;;  %s552_s28 = scalar_lea.vmem %s446_s27, 32  ;;  %p553_p1 = scmp.lt.s32.totalorder %s446_s27, %s446_s27 }
   0xc   :  { %72 = vperm.xlu0 %544, %v44_v11   ;;  %67 = vperm.xlu1 %545, %v43_v12   ;;  %v36_v22 = vld [vmem:[%s715_s3] sm:$0xff]  ;;  %v37_v55 = vld [vmem:[%s715_s3 + $0x8] sm:$0xff]  ;;  %v38_v56 = vld [vmem:[%s715_s3 + $0x10] sm:$0xff]  ;;  %v358_v12 = vstv %s718_s6 }
   0xd   :  { %523 = vmatprep.mubr.msk.f32.mxu1 %vm256_vm1, %v36_v22  ;;  %v39_v57 = vld [vmem:[%s715_s3 + $0x18] sm:$0xff]  ;;  %v40_v11 = vld [vmem:[%s717_s5] sm:$0x1]  ;;  %s548_s5 = scalar_lea.vmem %s446_s27, 16 }
   0xe   :  { %502 = vmatmul.mubr.msk.f32.gmra.mxu0 %vm95_vm0, %v33_v13  ;;  %p549_p0 = scmp.ne.s32.totalorder %s446_s27, %s548_s5  ;;  %p554_p2 = scmp.lt.s32.totalorder %s552_s28, %s548_s5 }
   0xf   :  { %504 = vmatprep.mubr.msk.f32.mxu0 %vm95_vm0, %v34_v14 }
  0x10   :  { %62 = vperm.xlu0 %544, %v42_v15   ;;  %57 = vperm.xlu1 %545, %v41_v16   ;;  %p555_p3 = por %p554_p2, %p553_p1 }
  0x12   :  { %505 = vmatmul.mubr.msk.f32.gmra.mxu0 %vm95_vm0, %v35_v17  ;;  %p556_p4 = pnand %p555_p3, %p549_p0 }
  0x13   :  { %537 = vmatprep.mubr.msk.f32.mxu0 %vm572_vm2, %v571_v58 }
  0x14   :  { %253 = vperm.xlu0 %544, %v52_v18   ;;  %248 = vperm.xlu1 %545, %v51_v19  }
  0x18   :  { %243 = vperm.xlu0 %544, %v50_v20   ;;  %238 = vperm.xlu1 %545, %v49_v21  }
  0x7f   :  { %v93_v24 = vpop.permute.xlu0 %92  ;;  %v83_v26 = vpop.permute.xlu1 %82 }
  0x83   :  { %v88_v29 = vpop.permute.xlu0 %87  ;;  %v78_v31 = vpop.permute.xlu1 %77 }
  0x87   :  { %v73_v35 = vpop.permute.xlu0 %72  ;;  %v68_v40 = vpop.permute.xlu1 %67 }
  0x8b   :  { %v63_v45 = vpop.permute.xlu0 %62  ;;  %v58_v48 = vpop.permute.xlu1 %57 }
  0x8f   :  { %v254_v59 = vpop.permute.xlu0 %253  ;;  %v249_v61 = vpop.permute.xlu1 %248 }
  0x93   :  { %v244_v1 = vpop.permute.xlu0 %243  ;;  %v239_v6 = vpop.permute.xlu1 %238 }
  0xc6   :  { %v497_v23 = vpop.f32.mrf.mxu0 }
  0xc7   :  { %v195_v49 = vadd.f32 %v497_v23, %v63_v45 }
  0xc8   :  { %v189_v25 = vpop.f32.mrf.mxu0 }
  0xc9   :  { %v190_v51 = vadd.f32 %v189_v25, %v58_v48  ;;  %v229_v53 = vmax.f32 %v195_v49, 0.0 }
  0xca   :  { %v500_v27 = vpop.f32.mrf.mxu0 }
  0xcb   :  { %v205_v43 = vadd.f32 %v500_v27, %v73_v35  ;;  %v228_v54 = vmax.f32 %v190_v51, 0.0 }
  0xcc   :  { %v199_v28 = vpop.f32.mrf.mxu0 }
  0xcd   :  { %v200_v46 = vadd.f32 %v199_v28, %v68_v40  ;;  %v231_v50 = vmax.f32 %v205_v43, 0.0 }
  0xce   :  { %v503_v30 = vpop.f32.mrf.mxu0 }
  0xcf   :  { %v215_v37 = vadd.f32 %v503_v30, %v83_v26  ;;  %v230_v52 = vmax.f32 %v200_v46, 0.0 }
  0xd0   :  { %v209_v32 = vpop.f32.mrf.mxu0 }
  0xd1   :  { %v210_v41 = vadd.f32 %v209_v32, %v78_v31  ;;  %v233_v44 = vmax.f32 %v215_v37, 0.0 }
  0xd2   :  { %v506_v33 = vpop.f32.mrf.mxu0 }
  0xd3   :  { %v225_v34 = vadd.f32 %v506_v33, %v93_v24  ;;  %v232_v47 = vmax.f32 %v210_v41, 0.0 }
  0xd4   :  { %v219_v36 = vpop.f32.mrf.mxu0 }
  0xd5   :  { %v235_v38 = vmax.f32 %v225_v34, 0.0  ;;  %v220_v39 = vadd.f32 %v219_v36, %v88_v29 }
  0xd7   :  { %v234_v42 = vmax.f32 %v220_v39, 0.0  ;;  %507 = vmatprep.subr.mxu1 %v235_v38 }
  0xd8   :  { %508 = vmatpush3.msra.mxu1 %v235_v38 }
  0xd9   :  { %509 = vmatprep.subr.mxu1 %v234_v42 }
  0xda   :  { %510 = vmatpush3.msra.mxu1 %v234_v42 }
  0xdb   :  { %511 = vmatprep.subr.mxu1 %v233_v44 }
  0xdc   :  { %512 = vmatpush3.msra.mxu1 %v233_v44 }
  0xdd   :  { %513 = vmatprep.subr.mxu1 %v232_v47 }
  0xde   :  { %514 = vmatpush3.msra.mxu1 %v232_v47 }
  0xdf   :  { %515 = vmatprep.subr.mxu1 %v231_v50 }
  0xe0   :  { %516 = vmatpush3.msra.mxu1 %v231_v50 }
  0xe1   :  { %517 = vmatprep.subr.mxu1 %v230_v52 }
  0xe2   :  { %518 = vmatpush3.msra.mxu1 %v230_v52 }
  0xe3   :  { %519 = vmatprep.subr.mxu1 %v229_v53 }
  0xe4   :  { %520 = vmatpush3.msra.mxu1 %v229_v53 }
  0xe5   :  { %521 = vmatprep.subr.mxu1 %v228_v54 }
  0xe6   :  { %522 = vmatpush3.msra.mxu1 %v228_v54 }
  0xe7   :  { %524 = vmatmul.mubr.msk.f32.vlgmr.msra.gmra.mxu1 %vm256_vm1, %v37_v55 }
  0xe8   :  { %526 = vmatprep.mubr.msk.f32.mxu1 %vm256_vm1, %v38_v56 }
  0xeb   :  { %527 = vmatmul.mubr.msk.f32.gmra.mxu1 %vm256_vm1, %v39_v57 }
 0x1a7   :  { %v525_v60 = vpop.f32.mrf.mxu1 }
 0x1a8   :  { %v341_v3 = vadd.f32 %v525_v60, %v244_v1 }
 0x1a9   :  { %v335_v62 = vpop.f32.mrf.mxu1 }
 0x1aa   :  { %v336_v7 = vadd.f32 %v335_v62, %v239_v6  ;;  %v355_v9 = vmax.f32 %v341_v3, 0.0 }
 0x1ab   :  { %v528_v63 = vpop.f32.mrf.mxu1 }
 0x1ac   :  { %v351_v0 = vadd.f32 %v528_v63, %v254_v59  ;;  %v354_v10 = vmax.f32 %v336_v7, 0.0 }
 0x1ad   :  { %v345_v2 = vpop.f32.mrf.mxu1 }
 0x1ae   :  { %v357_v4 = vmax.f32 %v351_v0, 0.0  ;;  %v346_v5 = vadd.f32 %v345_v2, %v249_v61 }
 0x1b0   :  { %v356_v8 = vmax.f32 %v346_v5, 0.0  ;;  %530 = vmatpush3.msra.mxu0 %v357_v4 }
 0x1b1   :  { %531 = vmatprep.subr.mxu0 %v571_v58 }
 0x1b2   :  { %532 = vmatpush3.msra.mxu0 %v356_v8 }
 0x1b3   :  { %533 = vmatprep.subr.mxu0 %v571_v58 }
 0x1b4   :  { %534 = vmatpush3.msra.mxu0 %v355_v9 }
 0x1b5   :  { %535 = vmatprep.subr.mxu0 %v571_v58 }
 0x1b6   :  { %536 = vmatpush3.msra.mxu0 %v354_v10 }
 0x1b7   :  { %538 = vmatmul.mubr.msk.f32.vlgmr.msra.gmra.mxu0 %vm359_vm3, %v40_v11 }
 0x277   :  { %v429_v13 = vpop.f32.mrf.mxu0 }
 0x278   :  { %v430_v14 = vadd.f32 %v429_v13, %v358_v12 }
 0x279   :  { %v539_v15 = vpop.f32.mrf.mxu0 }
 0x27a   :  { %v433_v16 = vmul.f32 0.5, %v430_v14 }
 0x27c   :  { %546 = vtanh.f32 %v433_v16 }
 0x289   :  { %v547_v17 = vpop.eup %546 }
 0x28a   :  { %v435_v18 = vmul.f32 0.5, %v547_v17 }
 0x28c   :  { %v436_v19 = vadd.f32 0.5, %v435_v18 }
 0x28e   :  { %438 = vst.msk [vmem:[#allocation3] sm:$0x1] %vm437_vm4, %v436_v19 }
 0x28f   :  { %559 = shalt.err (!%p556_p4)
}
 0x290   :  { %448 = dma.vmem_to_hbm [thread:$0]  %s446_s27, 16, %s719_s7, [#allocation4]  }
 0x291   :  { %568 = dma.done.wait [#allocation4], 16  }
 0x292   :  { %569 = vsyncadd [#allocation4], 4294967280 }
 0x293   :  { %452 = vsyncpa [#allocation4], 1 }

</bundles_post_ra>
